<compile_context>
chip_gen: v6e
topology: v6e:2x2x1
jax: 0.10.0
libtpu: 0.0.40
codegen_flags: <defaults>
</compile_context>

<pallas_src>
import functools
import math

import jax
import jax.numpy as jnp
from jax import lax
from jax.experimental import pallas as pl
from jax.experimental.pallas import tpu as pltpu


# ----------------------------------------------------------------------------
# Tile selection
# ----------------------------------------------------------------------------
def _pick_tile(dim, pref):
    """Largest tile <= pref that evenly divides dim (falls back to full dim)."""
    if dim <= pref:
        return dim
    if dim % pref == 0:
        return pref
    # TODO(synk): support ragged dims with masked partial tiles.
    return dim


# ----------------------------------------------------------------------------
# Tiled linear kernel:  y[p] = x[p] @ w[p]^T + b[p]     (nn.Linear semantics)
# ----------------------------------------------------------------------------
def _linear_kernel(x_ref, w_ref, b_ref, o_ref, acc_ref):
    # x: (tm, tk), w: (tn, tk) (nn.Linear (out, in) layout), b: (1, tn)
    k = pl.program_id(3)

    @pl.when(k == 0)
    def _():
        acc_ref[...] = jnp.zeros_like(acc_ref)

    # Contract the K axis of both operands directly; no in-kernel transpose.
    acc_ref[...] += lax.dot_general(
        x_ref[...], w_ref[...],
        dimension_numbers=(((1,), (1,)), ((), ())),
        preferred_element_type=jnp.float32,
    )

    @pl.when(k == pl.num_programs(3) - 1)
    def _():
        o_ref[...] = (acc_ref[...] + b_ref[...]).astype(o_ref.dtype)


def pallas_linear(x, w, b, *, tm_pref=256, tn_pref=256, tk_pref=512):
    """Batched tiled GEMM.

    x: (P, M, K), w: (P, N, K), b: (P, N)  ->  (P, M, N)
    Tile preferences sized for the 32 MiB scoped-VMEM default (safe on
    v5e/v6e/v7x); at the tiny demo shapes each dim collapses to a single block.
    """
    P, M, K = x.shape
    N = w.shape[1]
    tm = _pick_tile(M, tm_pref)
    tn = _pick_tile(N, tn_pref)
    tk = _pick_tile(K, tk_pref)
    grid = (P, M // tm, N // tn, K // tk)
    return pl.pallas_call(
        _linear_kernel,
        out_shape=jax.ShapeDtypeStruct((P, M, N), x.dtype),
        grid=grid,
        in_specs=[
            pl.BlockSpec((None, tm, tk), lambda p, i, j, k: (p, i, k)),
            pl.BlockSpec((None, tn, tk), lambda p, i, j, k: (p, j, k)),
            pl.BlockSpec((None, 1, tn), lambda p, i, j, k: (p, 0, j)),
        ],
        out_specs=pl.BlockSpec((None, tm, tn), lambda p, i, j, k: (p, i, j)),
        scratch_shapes=[pltpu.VMEM((tm, tn), jnp.float32)],
        compiler_params=pltpu.CompilerParams(
            dimension_semantics=("parallel", "parallel", "parallel", "arbitrary"),
        ),
    )(x, w, b.reshape(P, 1, N))


# ----------------------------------------------------------------------------
# Attention kernel (head split/merge inside the kernel, 'b t (h d)' layout)
# ----------------------------------------------------------------------------
def _mha_attention_kernel(q_ref, k_ref, v_ref, o_ref, w_ref, *,
                          n_heads, head_dim, inv_scale):
    # q: (tq, Hd), k/v: (T, Hd), o: (tq, Hd), w: (n_heads, tq, T)
    # Fold 1/sqrt(d) into the small query tile instead of the (tq, T) scores.
    q = q_ref[...].astype(jnp.float32) * inv_scale
    k = k_ref[...]
    v = v_ref[...]

    head_outs = []
    for h in range(n_heads):
        sl = slice(h * head_dim, (h + 1) * head_dim)
        qh, kh, vh = q[:, sl], k[:, sl], v[:, sl]
        # Q_h @ K_h^T via dot_general contracting the D axis (no k.T).
        s = lax.dot_general(
            qh, kh,
            dimension_numbers=(((1,), (1,)), ((), ())),
            preferred_element_type=jnp.float32,
        )
        m = jnp.max(s, axis=-1, keepdims=True)
        p = jnp.exp(s - m)
        denom = jnp.sum(p, axis=-1, keepdims=True)
        w = p * pl.reciprocal(denom, approx=False)      # EUP, not VPU divide
        w_ref[h] = w.astype(w_ref.dtype)
        head_outs.append(
            jnp.dot(w.astype(vh.dtype), vh, preferred_element_type=jnp.float32)
        )
    # Single lane-dense store of all heads already merged to 'b t (h d)'.
    o_ref[...] = jnp.concatenate(head_outs, axis=-1).astype(o_ref.dtype)


def pallas_mha_attention(q, k, v, n_heads, *, tq_pref=128):
    """q, k, v: (B, T, Hd) in 'b t (h d)' layout.

    Returns (attention (B, T, Hd) in 'b t (h d)', weights (B, H, T, T)).
    """
    B, T, Hd = q.shape
    D = Hd // n_heads
    tq = _pick_tile(T, tq_pref)
    inv_scale = 1.0 / math.sqrt(D)
    kernel = functools.partial(
        _mha_attention_kernel, n_heads=n_heads, head_dim=D, inv_scale=inv_scale
    )
    grid = (B, T // tq)
    return pl.pallas_call(
        kernel,
        out_shape=(
            jax.ShapeDtypeStruct((B, T, Hd), q.dtype),
            jax.ShapeDtypeStruct((B, n_heads, T, T), jnp.float32),
        ),
        grid=grid,
        in_specs=[
            pl.BlockSpec((None, tq, Hd), lambda b, i: (b, i, 0)),
            pl.BlockSpec((None, T, Hd), lambda b, i: (b, 0, 0)),
            pl.BlockSpec((None, T, Hd), lambda b, i: (b, 0, 0)),
        ],
        out_specs=(
            pl.BlockSpec((None, tq, Hd), lambda b, i: (b, i, 0)),
            pl.BlockSpec((None, n_heads, tq, T), lambda b, i: (b, 0, i, 0)),
        ),
        compiler_params=pltpu.CompilerParams(
            dimension_semantics=("parallel", "parallel"),
        ),
    )(q, k, v)


# ----------------------------------------------------------------------------
# Full forward pass (matches MultiHeadAttention.forward)
# ----------------------------------------------------------------------------
@functools.partial(jax.jit, static_argnums=(4,))
def multi_head_attention(query, key, value, params, n_heads):
    """Returns (fc_o(attention), attention_weights) like the PyTorch module."""
    B, T, Hd = query.shape

    # Fused Q/K/V projections: single pallas_call over a leading projection axis.
    x_qkv = jnp.stack([query, key, value], axis=0).reshape(3, B * T, Hd)
    qkv = pallas_linear(x_qkv, params["w_qkv"], params["b_qkv"])     # (3, B*T, Hd)
    Q = qkv[0].reshape(B, T, Hd)
    K = qkv[1].reshape(B, T, Hd)
    V = qkv[2].reshape(B, T, Hd)

    # Attention core; head split/merge handled inside the kernel.
    attn, attn_w = pallas_mha_attention(Q, K, V, n_heads)

    # Output projection (same tiled GEMM kernel, P = 1).
    out = pallas_linear(
        attn.reshape(1, B * T, Hd), params["wo"][None], params["bo"][None]
    )
    return out.reshape(B, T, Hd), attn_w


# ----------------------------------------------------------------------------
# Reference (pure JAX) for sanity check
# ----------------------------------------------------------------------------
def reference_mha(query, key, value, wq, bq, wk, bk, wv, bv, wo, bo, n_heads):
    B, T, Hd = query.shape
    D = Hd // n_heads
    scale = jnp.sqrt(jnp.float32(D))
    lin = lambda x, w, b: x @ w.T + b
    Q = lin(query, wq, bq).reshape(B, T, n_heads, D).transpose(0, 2, 1, 3)
    K = lin(key, wk, bk).reshape(B, T, n_heads, D).transpose(0, 2, 1, 3)
    V = lin(value, wv, bv).reshape(B, T, n_heads, D).transpose(0, 2, 1, 3)
    s = jnp.einsum("bhtd,bhsd->bhts", Q, K) / scale
    w = jax.nn.softmax(s, axis=-1)
    a = jnp.einsum("bhts,bhsd->bhtd", w, V)
    x = a.transpose(0, 2, 1, 3).reshape(B, T, Hd)
    return lin(x, wo, bo), w


# ----------------------------------------------------------------------------
# Main
# ----------------------------------------------------------------------------
if __name__ == "__main__":
    B, T, HIDDEN, N_HEADS = 2, 8, 32, 4

    root = jax.random.PRNGKey(0)
    keys = jax.random.split(root, 11)

    # Deterministic init (PyTorch nn.Linear shapes: W = (out, in), b = (out,)).
    bound = 1.0 / math.sqrt(HIDDEN)

    def init_linear(kw, kb):
        w = jax.random.uniform(kw, (HIDDEN, HIDDEN), jnp.float32, -bound, bound)
        b = jax.random.uniform(kb, (HIDDEN,), jnp.float32, -bound, bound)
        return w, b

    wq, bq = init_linear(keys[0], keys[1])
    wk, bk = init_linear(keys[2], keys[3])
    wv, bv = init_linear(keys[4], keys[5])
    wo, bo = init_linear(keys[6], keys[7])

    # Stack Q/K/V projection weights once for the fused projection kernel.
    params = dict(
        w_qkv=jnp.stack([wq, wk, wv], axis=0),   # (3, H, H), nn.Linear layout
        b_qkv=jnp.stack([bq, bk, bv], axis=0),   # (3, H)
        wo=wo, bo=bo,
    )

    # Inputs (query, key, value): (B, T, HIDDEN)
    query = jax.random.normal(keys[8], (B, T, HIDDEN), jnp.float32)
    key_in = jax.random.normal(keys[9], (B, T, HIDDEN), jnp.float32)
    value = jax.random.normal(keys[10], (B, T, HIDDEN), jnp.float32)

    out, attn_w = multi_head_attention(query, key_in, value, params, N_HEADS)
    out = jax.block_until_ready(out)
    attn_w = jax.block_until_ready(attn_w)

    ref_out, ref_w = reference_mha(
        query, key_in, value, wq, bq, wk, bk, wv, bv, wo, bo, N_HEADS
    )
    assert out.shape == (B, T, HIDDEN)
    assert attn_w.shape == (B, N_HEADS, T, T)
    assert jnp.allclose(out, ref_out, atol=1e-4, rtol=1e-4)
    assert jnp.allclose(attn_w, ref_w, atol=1e-5, rtol=1e-5)

    print("KERNEL_OK")
</pallas_src>

<mosaic_0001>
module attributes {stable_mosaic.version = 11 : i64} {
  func.func @_linear_kernel(%arg0: i32, %arg1: i32, %arg2: i32, %arg3: i32, %arg4: memref<1x16x32xf32, #tpu.memory_space<vmem>>, %arg5: memref<1x32x32xf32, #tpu.memory_space<vmem>>, %arg6: memref<1x1x32xf32, #tpu.memory_space<vmem>>, %arg7: memref<1x16x32xf32, #tpu.memory_space<vmem>>, %arg8: memref<16x32xf32, #tpu.memory_space<vmem>>) attributes {dimension_semantics = [#tpu.dimension_semantics<parallel>, #tpu.dimension_semantics<parallel>, #tpu.dimension_semantics<parallel>, #tpu.dimension_semantics<arbitrary>], iteration_bounds = array<i64: 3, 1, 1, 1>, scalar_prefetch = 0 : i64, scratch_operands = 1 : i64, tpu.core_type = #tpu.core_type<tc>, window_params = [{transform_indices = @transform_0, window_bounds = array<i64: 1, 16, 32>}, {transform_indices = @transform_1, window_bounds = array<i64: 1, 32, 32>}, {transform_indices = @transform_2, window_bounds = array<i64: 1, 1, 32>}, {transform_indices = @transform_3, window_bounds = array<i64: 1, 16, 32>}]} {
    %c0_i32 = arith.constant 0 : i32
    %0 = arith.cmpi eq, %arg3, %c0_i32 : i32
    %1 = arith.extui %0 : i1 to i32
    %c0_i32_0 = arith.constant 0 : i32
    %2 = arith.cmpi ne, %1, %c0_i32_0 : i32
    scf.if %2 {
      %cst_12 = arith.constant 0.000000e+00 : f32
      %14 = vector.broadcast %cst_12 : f32 to vector<16x32xf32>
      %c0_13 = arith.constant 0 : index
      %c0_14 = arith.constant 0 : index
      %15 = vector.load %arg8[%c0_13, %c0_14] : memref<16x32xf32, #tpu.memory_space<vmem>>, vector<16x32xf32>
      tpu.vector_store %arg8[%c0_13, %c0_14], %14 {strides = array<i32>} : memref<16x32xf32, #tpu.memory_space<vmem>>, vector<16x32xf32>,
    } else {
    }
    %c0 = arith.constant 0 : index
    %c0_1 = arith.constant 0 : index
    %3 = vector.load %arg8[%c0, %c0_1] : memref<16x32xf32, #tpu.memory_space<vmem>>, vector<16x32xf32>
    %c0_2 = arith.constant 0 : index
    %c0_3 = arith.constant 0 : index
    %c0_4 = arith.constant 0 : index
    %4 = vector.load %arg4[%c0_2, %c0_3, %c0_4] : memref<1x16x32xf32, #tpu.memory_space<vmem>>, vector<1x16x32xf32>
    %5 = vector.shape_cast %4 : vector<1x16x32xf32> to vector<16x32xf32>
    %c0_5 = arith.constant 0 : index
    %c0_6 = arith.constant 0 : index
    %c0_7 = arith.constant 0 : index
    %6 = vector.load %arg5[%c0_5, %c0_6, %c0_7] : memref<1x32x32xf32, #tpu.memory_space<vmem>>, vector<1x32x32xf32>
    %7 = vector.shape_cast %6 : vector<1x32x32xf32> to vector<32x32xf32>
    %cst = arith.constant dense<0.000000e+00> : vector<16x32xf32>
    %8 = tpu.matmul %5, %7, %cst {dimension_numbers = #tpu.dot_dimension_numbers<[1], [1], [0], [0], [0, 0, 1, 0], [], []>} : vector<16x32xf32>, vector<32x32xf32>, vector<16x32xf32> -> vector<16x32xf32>
    %9 = arith.addf %3, %8 : vector<16x32xf32>
    %c0_8 = arith.constant 0 : index
    %c0_9 = arith.constant 0 : index
    %10 = vector.load %arg8[%c0_8, %c0_9] : memref<16x32xf32, #tpu.memory_space<vmem>>, vector<16x32xf32>
    tpu.vector_store %arg8[%c0_8, %c0_9], %9 {strides = array<i32>} : memref<16x32xf32, #tpu.memory_space<vmem>>, vector<16x32xf32>,
    %c0_i32_10 = arith.constant 0 : i32
    %11 = arith.cmpi eq, %arg3, %c0_i32_10 : i32
    %12 = arith.extui %11 : i1 to i32
    %c0_i32_11 = arith.constant 0 : i32
    %13 = arith.cmpi ne, %12, %c0_i32_11 : i32
    scf.if %13 {
      %c0_12 = arith.constant 0 : index
      %c0_13 = arith.constant 0 : index
      %14 = vector.load %arg8[%c0_12, %c0_13] : memref<16x32xf32, #tpu.memory_space<vmem>>, vector<16x32xf32>
      %c0_14 = arith.constant 0 : index
      %c0_15 = arith.constant 0 : index
      %c0_16 = arith.constant 0 : index
      %15 = vector.load %arg6[%c0_14, %c0_15, %c0_16] : memref<1x1x32xf32, #tpu.memory_space<vmem>>, vector<1x1x32xf32>
      %16 = vector.shape_cast %15 : vector<1x1x32xf32> to vector<1x32xf32>
      %17 = vector.broadcast %16 : vector<1x32xf32> to vector<16x32xf32>
      %18 = arith.addf %14, %17 : vector<16x32xf32>
      %c0_17 = arith.constant 0 : index
      %c0_18 = arith.constant 0 : index
      %c0_19 = arith.constant 0 : index
      %19 = vector.load %arg7[%c0_17, %c0_18, %c0_19] : memref<1x16x32xf32, #tpu.memory_space<vmem>>, vector<1x16x32xf32>
      %20 = vector.shape_cast %19 : vector<1x16x32xf32> to vector<16x32xf32>
      %21 = vector.shape_cast %18 : vector<16x32xf32> to vector<1x16x32xf32>
      tpu.vector_store %arg7[%c0_17, %c0_18, %c0_19], %21 {strides = array<i32>} : memref<1x16x32xf32, #tpu.memory_space<vmem>>, vector<1x16x32xf32>,
    } else {
    }
    return
  }
  func.func @transform_0(%arg0: i32, %arg1: i32, %arg2: i32, %arg3: i32) -> (i32, i32, i32) {
    %c0_i32 = arith.constant 0 : i32
    return %arg0, %arg1, %arg3 : i32, i32, i32
  }
  func.func @transform_1(%arg0: i32, %arg1: i32, %arg2: i32, %arg3: i32) -> (i32, i32, i32) {
    %c0_i32 = arith.constant 0 : i32
    return %arg0, %arg2, %arg3 : i32, i32, i32
  }
  func.func @transform_2(%arg0: i32, %arg1: i32, %arg2: i32, %arg3: i32) -> (i32, i32, i32) {
    %c0_i32 = arith.constant 0 : i32
    %c0_i32_0 = arith.constant 0 : i32
    return %arg0, %c0_i32, %arg2 : i32, i32, i32
  }
  func.func @transform_3(%arg0: i32, %arg1: i32, %arg2: i32, %arg3: i32) -> (i32, i32, i32) {
    %c0_i32 = arith.constant 0 : i32
    return %arg0, %arg1, %arg2 : i32, i32, i32
  }
}

module attributes {stable_mosaic.version = 11 : i64} {
  func.func @_mha_attention_kernel(%arg0: i32, %arg1: i32, %arg2: memref<1x8x32xf32, #tpu.memory_space<vmem>>, %arg3: memref<1x8x32xf32, #tpu.memory_space<vmem>>, %arg4: memref<1x8x32xf32, #tpu.memory_space<vmem>>, %arg5: memref<1x8x32xf32, #tpu.memory_space<vmem>>, %arg6: memref<1x4x8x8xf32, #tpu.memory_space<vmem>>) attributes {dimension_semantics = [#tpu.dimension_semantics<parallel>, #tpu.dimension_semantics<parallel>], iteration_bounds = array<i64: 2, 1>, scalar_prefetch = 0 : i64, scratch_operands = 0 : i64, tpu.core_type = #tpu.core_type<tc>, window_params = [{transform_indices = @transform_0, window_bounds = array<i64: 1, 8, 32>}, {transform_indices = @transform_1, window_bounds = array<i64: 1, 8, 32>}, {transform_indices = @transform_2, window_bounds = array<i64: 1, 8, 32>}, {transform_indices = @transform_3, window_bounds = array<i64: 1, 8, 32>}, {transform_indices = @transform_4, window_bounds = array<i64: 1, 4, 8, 8>}]} {
    %c0 = arith.constant 0 : index
    %c0_0 = arith.constant 0 : index
    %c0_1 = arith.constant 0 : index
    %0 = vector.load %arg2[%c0, %c0_0, %c0_1] : memref<1x8x32xf32, #tpu.memory_space<vmem>>, vector<1x8x32xf32>
    %1 = vector.shape_cast %0 : vector<1x8x32xf32> to vector<8x32xf32>
    %cst = arith.constant 0.353553385 : f32
    %2 = vector.broadcast %cst : f32 to vector<8x32xf32>
    %3 = arith.mulf %1, %2 : vector<8x32xf32>
    %c0_2 = arith.constant 0 : index
    %c0_3 = arith.constant 0 : index
    %c0_4 = arith.constant 0 : index
    %4 = vector.load %arg3[%c0_2, %c0_3, %c0_4] : memref<1x8x32xf32, #tpu.memory_space<vmem>>, vector<1x8x32xf32>
    %5 = vector.shape_cast %4 : vector<1x8x32xf32> to vector<8x32xf32>
    %c0_5 = arith.constant 0 : index
    %c0_6 = arith.constant 0 : index
    %c0_7 = arith.constant 0 : index
    %6 = vector.load %arg4[%c0_5, %c0_6, %c0_7] : memref<1x8x32xf32, #tpu.memory_space<vmem>>, vector<1x8x32xf32>
    %7 = vector.shape_cast %6 : vector<1x8x32xf32> to vector<8x32xf32>
    %8 = vector.extract_strided_slice %3 {offsets = [0, 0], sizes = [8, 8], strides = [1, 1]} : vector<8x32xf32> to vector<8x8xf32>
    %9 = vector.extract_strided_slice %5 {offsets = [0, 0], sizes = [8, 8], strides = [1, 1]} : vector<8x32xf32> to vector<8x8xf32>
    %10 = vector.extract_strided_slice %7 {offsets = [0, 0], sizes = [8, 8], strides = [1, 1]} : vector<8x32xf32> to vector<8x8xf32>
    %cst_8 = arith.constant dense<0.000000e+00> : vector<8x8xf32>
    %11 = tpu.matmul %8, %9, %cst_8 {dimension_numbers = #tpu.dot_dimension_numbers<[1], [1], [0], [0], [0, 0, 1, 0], [], []>} : vector<8x8xf32>, vector<8x8xf32>, vector<8x8xf32> -> vector<8x8xf32>
    %cst_9 = arith.constant dense<0xFF800000> : vector<8xf32>
    %12 = vector.multi_reduction <maximumf>, %11, %cst_9 [1] : vector<8x8xf32> to vector<8xf32>
    %13 = vector.shape_cast %12 : vector<8xf32> to vector<8x1xf32>
    %14 = vector.broadcast %13 : vector<8x1xf32> to vector<8x8xf32>
    %15 = arith.subf %11, %14 : vector<8x8xf32>
    %16 = math.exp %15 : vector<8x8xf32>
    %cst_10 = arith.constant dense<0.000000e+00> : vector<8xf32>
    %17 = vector.multi_reduction <add>, %16, %cst_10 [1] : vector<8x8xf32> to vector<8xf32>
    %18 = vector.shape_cast %17 : vector<8xf32> to vector<8x1xf32>
    %19 = tpu.reciprocal %18 : vector<8x1xf32> -> vector<8x1xf32>
    %20 = vector.broadcast %19 : vector<8x1xf32> to vector<8x8xf32>
    %21 = arith.mulf %16, %20 : vector<8x8xf32>
    %c0_11 = arith.constant 0 : index
    %c0_12 = arith.constant 0 : index
    %c0_13 = arith.constant 0 : index
    %c0_14 = arith.constant 0 : index
    %22 = vector.load %arg6[%c0_11, %c0_12, %c0_13, %c0_14] : memref<1x4x8x8xf32, #tpu.memory_space<vmem>>, vector<1x1x8x8xf32>
    %23 = vector.shape_cast %22 : vector<1x1x8x8xf32> to vector<8x8xf32>
    %24 = vector.shape_cast %21 : vector<8x8xf32> to vector<1x1x8x8xf32>
    tpu.vector_store %arg6[%c0_11, %c0_12, %c0_13, %c0_14], %24 {strides = array<i32>} : memref<1x4x8x8xf32, #tpu.memory_space<vmem>>, vector<1x1x8x8xf32>,
    %cst_15 = arith.constant dense<0.000000e+00> : vector<8x8xf32>
    %25 = tpu.matmul %21, %10, %cst_15 {dimension_numbers = #tpu.dot_dimension_numbers<[1], [0], [0], [1], [0, 0, 1, 1], [], []>} : vector<8x8xf32>, vector<8x8xf32>, vector<8x8xf32> -> vector<8x8xf32>
    %26 = vector.extract_strided_slice %3 {offsets = [0, 8], sizes = [8, 8], strides = [1, 1]} : vector<8x32xf32> to vector<8x8xf32>
    %27 = vector.extract_strided_slice %5 {offsets = [0, 8], sizes = [8, 8], strides = [1, 1]} : vector<8x32xf32> to vector<8x8xf32>
    %28 = vector.extract_strided_slice %7 {offsets = [0, 8], sizes = [8, 8], strides = [1, 1]} : vector<8x32xf32> to vector<8x8xf32>
    %cst_16 = arith.constant dense<0.000000e+00> : vector<8x8xf32>
    %29 = tpu.matmul %26, %27, %cst_16 {dimension_numbers = #tpu.dot_dimension_numbers<[1], [1], [0], [0], [0, 0, 1, 0], [], []>} : vector<8x8xf32>, vector<8x8xf32>, vector<8x8xf32> -> vector<8x8xf32>
    %cst_17 = arith.constant dense<0xFF800000> : vector<8xf32>
    %30 = vector.multi_reduction <maximumf>, %29, %cst_17 [1] : vector<8x8xf32> to vector<8xf32>
    %31 = vector.shape_cast %30 : vector<8xf32> to vector<8x1xf32>
    %32 = vector.broadcast %31 : vector<8x1xf32> to vector<8x8xf32>
    %33 = arith.subf %29, %32 : vector<8x8xf32>
    %34 = math.exp %33 : vector<8x8xf32>
    %cst_18 = arith.constant dense<0.000000e+00> : vector<8xf32>
    %35 = vector.multi_reduction <add>, %34, %cst_18 [1] : vector<8x8xf32> to vector<8xf32>
    %36 = vector.shape_cast %35 : vector<8xf32> to vector<8x1xf32>
    %37 = tpu.reciprocal %36 : vector<8x1xf32> -> vector<8x1xf32>
    %38 = vector.broadcast %37 : vector<8x1xf32> to vector<8x8xf32>
    %39 = arith.mulf %34, %38 : vector<8x8xf32>
    %c0_19 = arith.constant 0 : index
    %c1 = arith.constant 1 : index
    %c0_20 = arith.constant 0 : index
    %c0_21 = arith.constant 0 : index
    %40 = vector.load %arg6[%c0_19, %c1, %c0_20, %c0_21] : memref<1x4x8x8xf32, #tpu.memory_space<vmem>>, vector<1x1x8x8xf32>
    %41 = vector.shape_cast %40 : vector<1x1x8x8xf32> to vector<8x8xf32>
    %42 = vector.shape_cast %39 : vector<8x8xf32> to vector<1x1x8x8xf32>
    tpu.vector_store %arg6[%c0_19, %c1, %c0_20, %c0_21], %42 {strides = array<i32>} : memref<1x4x8x8xf32, #tpu.memory_space<vmem>>, vector<1x1x8x8xf32>,
    %cst_22 = arith.constant dense<0.000000e+00> : vector<8x8xf32>
    %43 = tpu.matmul %39, %28, %cst_22 {dimension_numbers = #tpu.dot_dimension_numbers<[1], [0], [0], [1], [0, 0, 1, 1], [], []>} : vector<8x8xf32>, vector<8x8xf32>, vector<8x8xf32> -> vector<8x8xf32>
    %44 = vector.extract_strided_slice %3 {offsets = [0, 16], sizes = [8, 8], strides = [1, 1]} : vector<8x32xf32> to vector<8x8xf32>
    %45 = vector.extract_strided_slice %5 {offsets = [0, 16], sizes = [8, 8], strides = [1, 1]} : vector<8x32xf32> to vector<8x8xf32>
    %46 = vector.extract_strided_slice %7 {offsets = [0, 16], sizes = [8, 8], strides = [1, 1]} : vector<8x32xf32> to vector<8x8xf32>
    %cst_23 = arith.constant dense<0.000000e+00> : vector<8x8xf32>
    %47 = tpu.matmul %44, %45, %cst_23 {dimension_numbers = #tpu.dot_dimension_numbers<[1], [1], [0], [0], [0, 0, 1, 0], [], []>} : vector<8x8xf32>, vector<8x8xf32>, vector<8x8xf32> -> vector<8x8xf32>
    %cst_24 = arith.constant dense<0xFF800000> : vector<8xf32>
    %48 = vector.multi_reduction <maximumf>, %47, %cst_24 [1] : vector<8x8xf32> to vector<8xf32>
    %49 = vector.shape_cast %48 : vector<8xf32> to vector<8x1xf32>
    %50 = vector.broadcast %49 : vector<8x1xf32> to vector<8x8xf32>
    %51 = arith.subf %47, %50 : vector<8x8xf32>
    %52 = math.exp %51 : vector<8x8xf32>
    %cst_25 = arith.constant dense<0.000000e+00> : vector<8xf32>
    %53 = vector.multi_reduction <add>, %52, %cst_25 [1] : vector<8x8xf32> to vector<8xf32>
    %54 = vector.shape_cast %53 : vector<8xf32> to vector<8x1xf32>
    %55 = tpu.reciprocal %54 : vector<8x1xf32> -> vector<8x1xf32>
    %56 = vector.broadcast %55 : vector<8x1xf32> to vector<8x8xf32>
    %57 = arith.mulf %52, %56 : vector<8x8xf32>
    %c0_26 = arith.constant 0 : index
    %c2 = arith.constant 2 : index
    %c0_27 = arith.constant 0 : index
    %c0_28 = arith.constant 0 : index
    %58 = vector.load %arg6[%c0_26, %c2, %c0_27, %c0_28] : memref<1x4x8x8xf32, #tpu.memory_space<vmem>>, vector<1x1x8x8xf32>
    %59 = vector.shape_cast %58 : vector<1x1x8x8xf32> to vector<8x8xf32>
    %60 = vector.shape_cast %57 : vector<8x8xf32> to vector<1x1x8x8xf32>
    tpu.vector_store %arg6[%c0_26, %c2, %c0_27, %c0_28], %60 {strides = array<i32>} : memref<1x4x8x8xf32, #tpu.memory_space<vmem>>, vector<1x1x8x8xf32>,
    %cst_29 = arith.constant dense<0.000000e+00> : vector<8x8xf32>
    %61 = tpu.matmul %57, %46, %cst_29 {dimension_numbers = #tpu.dot_dimension_numbers<[1], [0], [0], [1], [0, 0, 1, 1], [], []>} : vector<8x8xf32>, vector<8x8xf32>, vector<8x8xf32> -> vector<8x8xf32>
    %62 = vector.extract_strided_slice %3 {offsets = [0, 24], sizes = [8, 8], strides = [1, 1]} : vector<8x32xf32> to vector<8x8xf32>
    %63 = vector.extract_strided_slice %5 {offsets = [0, 24], sizes = [8, 8], strides = [1, 1]} : vector<8x32xf32> to vector<8x8xf32>
    %64 = vector.extract_strided_slice %7 {offsets = [0, 24], sizes = [8, 8], strides = [1, 1]} : vector<8x32xf32> to vector<8x8xf32>
    %cst_30 = arith.constant dense<0.000000e+00> : vector<8x8xf32>
    %65 = tpu.matmul %62, %63, %cst_30 {dimension_numbers = #tpu.dot_dimension_numbers<[1], [1], [0], [0], [0, 0, 1, 0], [], []>} : vector<8x8xf32>, vector<8x8xf32>, vector<8x8xf32> -> vector<8x8xf32>
    %cst_31 = arith.constant dense<0xFF800000> : vector<8xf32>
    %66 = vector.multi_reduction <maximumf>, %65, %cst_31 [1] : vector<8x8xf32> to vector<8xf32>
    %67 = vector.shape_cast %66 : vector<8xf32> to vector<8x1xf32>
    %68 = vector.broadcast %67 : vector<8x1xf32> to vector<8x8xf32>
    %69 = arith.subf %65, %68 : vector<8x8xf32>
    %70 = math.exp %69 : vector<8x8xf32>
    %cst_32 = arith.constant dense<0.000000e+00> : vector<8xf32>
    %71 = vector.multi_reduction <add>, %70, %cst_32 [1] : vector<8x8xf32> to vector<8xf32>
    %72 = vector.shape_cast %71 : vector<8xf32> to vector<8x1xf32>
    %73 = tpu.reciprocal %72 : vector<8x1xf32> -> vector<8x1xf32>
    %74 = vector.broadcast %73 : vector<8x1xf32> to vector<8x8xf32>
    %75 = arith.mulf %70, %74 : vector<8x8xf32>
    %c0_33 = arith.constant 0 : index
    %c3 = arith.constant 3 : index
    %c0_34 = arith.constant 0 : index
    %c0_35 = arith.constant 0 : index
    %76 = vector.load %arg6[%c0_33, %c3, %c0_34, %c0_35] : memref<1x4x8x8xf32, #tpu.memory_space<vmem>>, vector<1x1x8x8xf32>
    %77 = vector.shape_cast %76 : vector<1x1x8x8xf32> to vector<8x8xf32>
    %78 = vector.shape_cast %75 : vector<8x8xf32> to vector<1x1x8x8xf32>
    tpu.vector_store %arg6[%c0_33, %c3, %c0_34, %c0_35], %78 {strides = array<i32>} : memref<1x4x8x8xf32, #tpu.memory_space<vmem>>, vector<1x1x8x8xf32>,
    %cst_36 = arith.constant dense<0.000000e+00> : vector<8x8xf32>
    %79 = tpu.matmul %75, %64, %cst_36 {dimension_numbers = #tpu.dot_dimension_numbers<[1], [0], [0], [1], [0, 0, 1, 1], [], []>} : vector<8x8xf32>, vector<8x8xf32>, vector<8x8xf32> -> vector<8x8xf32>
    %80 = tpu.concatenate %25, %43, %61, %79 in 1 : vector<8x8xf32>, vector<8x8xf32>, vector<8x8xf32>, vector<8x8xf32> -> vector<8x32xf32>
    %c0_37 = arith.constant 0 : index
    %c0_38 = arith.constant 0 : index
    %c0_39 = arith.constant 0 : index
    %81 = vector.load %arg5[%c0_37, %c0_38, %c0_39] : memref<1x8x32xf32, #tpu.memory_space<vmem>>, vector<1x8x32xf32>
    %82 = vector.shape_cast %81 : vector<1x8x32xf32> to vector<8x32xf32>
    %83 = vector.shape_cast %80 : vector<8x32xf32> to vector<1x8x32xf32>
    tpu.vector_store %arg5[%c0_37, %c0_38, %c0_39], %83 {strides = array<i32>} : memref<1x8x32xf32, #tpu.memory_space<vmem>>, vector<1x8x32xf32>,
    return
  }
  func.func @transform_0(%arg0: i32, %arg1: i32) -> (i32, i32, i32) {
    %c0_i32 = arith.constant 0 : i32
    %c0_i32_0 = arith.constant 0 : i32
    return %arg0, %arg1, %c0_i32 : i32, i32, i32
  }
  func.func @transform_1(%arg0: i32, %arg1: i32) -> (i32, i32, i32) {
    %c0_i32 = arith.constant 0 : i32
    %c0_i32_0 = arith.constant 0 : i32
    %c0_i32_1 = arith.constant 0 : i32
    return %arg0, %c0_i32, %c0_i32_0 : i32, i32, i32
  }
  func.func @transform_2(%arg0: i32, %arg1: i32) -> (i32, i32, i32) {
    %c0_i32 = arith.constant 0 : i32
    %c0_i32_0 = arith.constant 0 : i32
    %c0_i32_1 = arith.constant 0 : i32
    return %arg0, %c0_i32, %c0_i32_0 : i32, i32, i32
  }
  func.func @transform_3(%arg0: i32, %arg1: i32) -> (i32, i32, i32) {
    %c0_i32 = arith.constant 0 : i32
    %c0_i32_0 = arith.constant 0 : i32
    return %arg0, %arg1, %c0_i32 : i32, i32, i32
  }
  func.func @transform_4(%arg0: i32, %arg1: i32) -> (i32, i32, i32, i32) {
    %c0_i32 = arith.constant 0 : i32
    %c0_i32_0 = arith.constant 0 : i32
    %c0_i32_1 = arith.constant 0 : i32
    return %arg0, %c0_i32, %arg1, %c0_i32_0 : i32, i32, i32, i32
  }
}

module attributes {stable_mosaic.version = 11 : i64} {
  func.func @_linear_kernel(%arg0: i32, %arg1: i32, %arg2: i32, %arg3: i32, %arg4: memref<1x16x32xf32, #tpu.memory_space<vmem>>, %arg5: memref<1x32x32xf32, #tpu.memory_space<vmem>>, %arg6: memref<1x1x32xf32, #tpu.memory_space<vmem>>, %arg7: memref<1x16x32xf32, #tpu.memory_space<vmem>>, %arg8: memref<16x32xf32, #tpu.memory_space<vmem>>) attributes {dimension_semantics = [#tpu.dimension_semantics<parallel>, #tpu.dimension_semantics<parallel>, #tpu.dimension_semantics<parallel>, #tpu.dimension_semantics<arbitrary>], iteration_bounds = array<i64: 1, 1, 1, 1>, scalar_prefetch = 0 : i64, scratch_operands = 1 : i64, tpu.core_type = #tpu.core_type<tc>, window_params = [{transform_indices = @transform_0, window_bounds = array<i64: 1, 16, 32>}, {transform_indices = @transform_1, window_bounds = array<i64: 1, 32, 32>}, {transform_indices = @transform_2, window_bounds = array<i64: 1, 1, 32>}, {transform_indices = @transform_3, window_bounds = array<i64: 1, 16, 32>}]} {
    %c0_i32 = arith.constant 0 : i32
    %0 = arith.cmpi eq, %arg3, %c0_i32 : i32
    %1 = arith.extui %0 : i1 to i32
    %c0_i32_0 = arith.constant 0 : i32
    %2 = arith.cmpi ne, %1, %c0_i32_0 : i32
    scf.if %2 {
      %cst_12 = arith.constant 0.000000e+00 : f32
      %14 = vector.broadcast %cst_12 : f32 to vector<16x32xf32>
      %c0_13 = arith.constant 0 : index
      %c0_14 = arith.constant 0 : index
      %15 = vector.load %arg8[%c0_13, %c0_14] : memref<16x32xf32, #tpu.memory_space<vmem>>, vector<16x32xf32>
      tpu.vector_store %arg8[%c0_13, %c0_14], %14 {strides = array<i32>} : memref<16x32xf32, #tpu.memory_space<vmem>>, vector<16x32xf32>,
    } else {
    }
    %c0 = arith.constant 0 : index
    %c0_1 = arith.constant 0 : index
    %3 = vector.load %arg8[%c0, %c0_1] : memref<16x32xf32, #tpu.memory_space<vmem>>, vector<16x32xf32>
    %c0_2 = arith.constant 0 : index
    %c0_3 = arith.constant 0 : index
    %c0_4 = arith.constant 0 : index
    %4 = vector.load %arg4[%c0_2, %c0_3, %c0_4] : memref<1x16x32xf32, #tpu.memory_space<vmem>>, vector<1x16x32xf32>
    %5 = vector.shape_cast %4 : vector<1x16x32xf32> to vector<16x32xf32>
    %c0_5 = arith.constant 0 : index
    %c0_6 = arith.constant 0 : index
    %c0_7 = arith.constant 0 : index
    %6 = vector.load %arg5[%c0_5, %c0_6, %c0_7] : memref<1x32x32xf32, #tpu.memory_space<vmem>>, vector<1x32x32xf32>
    %7 = vector.shape_cast %6 : vector<1x32x32xf32> to vector<32x32xf32>
    %cst = arith.constant dense<0.000000e+00> : vector<16x32xf32>
    %8 = tpu.matmul %5, %7, %cst {dimension_numbers = #tpu.dot_dimension_numbers<[1], [1], [0], [0], [0, 0, 1, 0], [], []>} : vector<16x32xf32>, vector<32x32xf32>, vector<16x32xf32> -> vector<16x32xf32>
    %9 = arith.addf %3, %8 : vector<16x32xf32>
    %c0_8 = arith.constant 0 : index
    %c0_9 = arith.constant 0 : index
    %10 = vector.load %arg8[%c0_8, %c0_9] : memref<16x32xf32, #tpu.memory_space<vmem>>, vector<16x32xf32>
    tpu.vector_store %arg8[%c0_8, %c0_9], %9 {strides = array<i32>} : memref<16x32xf32, #tpu.memory_space<vmem>>, vector<16x32xf32>,
    %c0_i32_10 = arith.constant 0 : i32
    %11 = arith.cmpi eq, %arg3, %c0_i32_10 : i32
    %12 = arith.extui %11 : i1 to i32
    %c0_i32_11 = arith.constant 0 : i32
    %13 = arith.cmpi ne, %12, %c0_i32_11 : i32
    scf.if %13 {
      %c0_12 = arith.constant 0 : index
      %c0_13 = arith.constant 0 : index
      %14 = vector.load %arg8[%c0_12, %c0_13] : memref<16x32xf32, #tpu.memory_space<vmem>>, vector<16x32xf32>
      %c0_14 = arith.constant 0 : index
      %c0_15 = arith.constant 0 : index
      %c0_16 = arith.constant 0 : index
      %15 = vector.load %arg6[%c0_14, %c0_15, %c0_16] : memref<1x1x32xf32, #tpu.memory_space<vmem>>, vector<1x1x32xf32>
      %16 = vector.shape_cast %15 : vector<1x1x32xf32> to vector<1x32xf32>
      %17 = vector.broadcast %16 : vector<1x32xf32> to vector<16x32xf32>
      %18 = arith.addf %14, %17 : vector<16x32xf32>
      %c0_17 = arith.constant 0 : index
      %c0_18 = arith.constant 0 : index
      %c0_19 = arith.constant 0 : index
      %19 = vector.load %arg7[%c0_17, %c0_18, %c0_19] : memref<1x16x32xf32, #tpu.memory_space<vmem>>, vector<1x16x32xf32>
      %20 = vector.shape_cast %19 : vector<1x16x32xf32> to vector<16x32xf32>
      %21 = vector.shape_cast %18 : vector<16x32xf32> to vector<1x16x32xf32>
      tpu.vector_store %arg7[%c0_17, %c0_18, %c0_19], %21 {strides = array<i32>} : memref<1x16x32xf32, #tpu.memory_space<vmem>>, vector<1x16x32xf32>,
    } else {
    }
    return
  }
  func.func @transform_0(%arg0: i32, %arg1: i32, %arg2: i32, %arg3: i32) -> (i32, i32, i32) {
    %c0_i32 = arith.constant 0 : i32
    return %arg0, %arg1, %arg3 : i32, i32, i32
  }
  func.func @transform_1(%arg0: i32, %arg1: i32, %arg2: i32, %arg3: i32) -> (i32, i32, i32) {
    %c0_i32 = arith.constant 0 : i32
    return %arg0, %arg2, %arg3 : i32, i32, i32
  }
  func.func @transform_2(%arg0: i32, %arg1: i32, %arg2: i32, %arg3: i32) -> (i32, i32, i32) {
    %c0_i32 = arith.constant 0 : i32
    %c0_i32_0 = arith.constant 0 : i32
    return %arg0, %c0_i32, %arg2 : i32, i32, i32
  }
  func.func @transform_3(%arg0: i32, %arg1: i32, %arg2: i32, %arg3: i32) -> (i32, i32, i32) {
    %c0_i32 = arith.constant 0 : i32
    return %arg0, %arg1, %arg2 : i32, i32, i32
  }
}

</mosaic_0001>

<bundles_post_ra>
// kernel: multi_head_attention.3
= control target key start
LH: loop header
LB: loop body
LE: loop exit
PB: predicated region body
PF: predicated region fallthrough
CT: control target
= control target key end

     0   :  { %s693_s12 = smov 0   ;;  %s695_s13 = smov 0   ;;  %s753_s0 = inlined_call_operand.vmem [shape: f32[3,16,32], index: 0, kind: input, shape index: {}]   ;;  %s754_s1 = inlined_call_operand.vmem [shape: f32[3,32,32], index: 1, kind: input, shape index: {}]   ;;  %s755_s2 = inlined_call_operand.vmem [shape: f32[3,1,32], index: 2, kind: input, shape index: {}]   ;;  %s756_s3 = inlined_call_operand.vmem [shape: f32[3,16,32], index: 3, kind: output, shape index: {}]  }
   0x1   :  { %s697_s14 = smov 0  }
   0x2 LB: > { %s39_s15 = sadd.s32 1, %s666_s13  ;;  %p587_p0 = scmp.ge.s32.totalorder %s670_s14, 1  ;;  %s670_s14 = sphi %s697_s14, %s13_s14   ;;  %s666_s13 = sphi %s695_s13, %s758_s13   ;;  %s662_s12 = sphi %s693_s12, %s757_s12  }
   0x3   : > { %p41_p1 = scmp.ge.s32.totalorder %s39_s15, 3  ;;  %p214_p2 = scmp.lt.s32.totalorder %s670_s14, 4 }
   0x5   : > { %s760_s15 = smov (%p41_p1, %s39_s15), 0  ;;  %p215_p3 = pnand %p587_p0, %p214_p2 }
   0x6   : > { %p271_p4 = scmp.lt.s32.totalorder (!%p215_p3), %s662_s12, 2 }
   0x7   : > { %218 = sbr.rel (%p215_p3) target bundleno = 240 (0xf0), region = 32 }
   0xc   : > { %vm319_vm0 = vcmask 261120   ;;  %v672_v0 = vmov 0.0   ;;  %s762_s12 = smov (!%p271_p4, %s662_s12), 2 }
   0xd   : > { %321 = vst.msk [vmem:[#allocation2 + $0x8] sm:$0xff] %vm319_vm0, %v672_v0  ;;  %320 = vst.msk [vmem:[#allocation2] sm:$0xff] %vm319_vm0, %v672_v0  ;;  %s604_s16 = sshll.u32 %s762_s12, 5  ;;  %s603_s20 = sshll.u32 %s762_s12, 4 }
   0xe   : > { %s294_s19 = scalar_lea.vmem %s754_s1, %s604_s16  ;;  %s281_s23 = scalar_lea.vmem %s753_s0, %s603_s20 }
   0xf   : > { %v329_v1 = vld [vmem:[%s294_s19 + $0x18] sm:$0xff]  ;;  %v328_v2 = vld [vmem:[%s294_s19 + $0x10] sm:$0xff]  ;;  %v324_v3 = vld [vmem:[%s281_s23] sm:$0xff]  ;;  %s301_s26 = scalar_lea.vmem %s755_s2, %s762_s12  ;;  %s313_s29 = scalar_lea.vmem %s756_s3, %s603_s20 }
  0x10   : > { %612 = vmatprep.subr.msk.mxu0 %vm319_vm0, %v329_v1  ;;  %620 = vmatprep.mubr.msk.f32.mxu0 %vm319_vm0, %v324_v3  ;;  %v327_v4 = vld [vmem:[%s294_s19 + $0x8] sm:$0xff]  ;;  %v326_v5 = vld [vmem:[%s294_s19] sm:$0xff] }
  0x11   : > { %613 = vmatpush3.xpose.msk.msra.mxu0 %vm319_vm0, %v329_v1  ;;  %v325_v6 = vld [vmem:[%s281_s23 + $0x8] sm:$0xff]  ;;  %v600_v13 = vld [vmem:[%s301_s26] ss:$0 sm:$0xff] }
  0x12   : > { %614 = vmatprep.subr.msk.mxu0 %vm319_vm0, %v328_v2 }
  0x14   : > { %v323_v7 = vld [vmem:[#allocation2 + $0x8] sm:$0xff]  ;;  %v322_v9 = vld [vmem:[#allocation2] sm:$0xff] }
  0x15   : > { %615 = vmatpush3.xpose.msk.msra.mxu0 %vm319_vm0, %v328_v2 }
  0x16   : > { %616 = vmatprep.subr.msk.mxu0 %vm319_vm0, %v327_v4 }
  0x19   : > { %617 = vmatpush3.xpose.msk.msra.mxu0 %vm319_vm0, %v327_v4 }
  0x1a   : > { %618 = vmatprep.subr.msk.mxu0 %vm319_vm0, %v326_v5 }
  0x1d   : > { %619 = vmatpush3.xpose.msk.msra.mxu0 %vm319_vm0, %v326_v5 }
  0x20   : > { %621 = vmatmul.mubr.msk.f32.vlgmr.msra.gmra.mxu0 %vm319_vm0, %v325_v6 }
  0xe0   : > { %v622_v8 = vpop.f32.mrf.mxu0 }
  0xe1   : > { %v425_v10 = vadd.f32 %v622_v8, %v323_v7 }
  0xe2   : > { %v415_v11 = vpop.f32.mrf.mxu0 }
  0xe3   : > { %427 = vst.msk [vmem:[#allocation2 + $0x8] sm:$0xff] %vm319_vm0, %v425_v10  ;;  %v424_v12 = vadd.f32 %v415_v11, %v322_v9 }
  0xe5   : > { %426 = vst.msk [vmem:[#allocation2] sm:$0xff] %vm319_vm0, %v424_v12 }
  0xea   : > { %v432_v14 = vld [vmem:[#allocation2 + $0x8] sm:$0xff] }
  0xeb   : > { %v441_v15 = vadd.f32 %v600_v13, %v432_v14 }
  0xec   : > { %v431_v16 = vld [vmem:[#allocation2] sm:$0xff] }
  0xed   : > { %443 = vst.msk [vmem:[%s313_s29 + $0x8] sm:$0xff] %vm319_vm0, %v441_v15  ;;  %v440_v17 = vadd.f32 %v600_v13, %v431_v16 }
  0xef   : > { %442 = vst.msk [vmem:[%s313_s29] sm:$0xff] %vm319_vm0, %v440_v17 }
  0xf0 PF: > { %s13_s14 = sadd.s32 1, %s670_s14   ;;  %s757_s12 = smov %s666_s13 }
  0xf1   : > { %p10_p5 = scmp.ge.s32.totalorder %s13_s14, 5   ;;  %s758_s13 = smov %s760_s15 }
  0xf3   :  { %12 = sbr.rel (!%p10_p5) target bundleno = 2 (0x2), region = 76 }

// kernel: multi_head_attention.5
= control target key start
LH: loop header
LB: loop body
LE: loop exit
PB: predicated region body
PF: predicated region fallthrough
CT: control target
= control target key end

     0   :  { %vm19_vm0 = vcmask 261120   ;;  %v210_v3 = vmov 0.0   ;;  %s274_s0 = inlined_call_operand.vmem [shape: f32[1,16,32], index: 0, kind: input, shape index: {}]   ;;  %s275_s1 = inlined_call_operand.vmem [shape: f32[1,32,32], index: 1, kind: input, shape index: {}]   ;;  %s276_s2 = inlined_call_operand.vmem [shape: f32[1,1,32], index: 2, kind: input, shape index: {}]   ;;  %s277_s3 = inlined_call_operand.hbm [shape: f32[1,16,32], index: 3, kind: output, shape index: {}]  }
   0x1   :  { %v29_v0 = vld [vmem:[%s275_s1 + $0x18] sm:$0xff]  ;;  %v28_v1 = vld [vmem:[%s275_s1 + $0x10] sm:$0xff]  ;;  %v24_v2 = vld [vmem:[%s274_s0] sm:$0xff]  ;;  %21 = vst.msk [vmem:[#allocation2 + $0x8] sm:$0xff] %vm19_vm0, %v210_v3 }
   0x2   :  { %173 = vmatprep.subr.msk.mxu0 %vm19_vm0, %v29_v0  ;;  %20 = vst.msk [vmem:[#allocation2] sm:$0xff] %vm19_vm0, %v210_v3  ;;  %181 = vmatprep.mubr.msk.f32.mxu0 %vm19_vm0, %v24_v2 }
   0x3   :  { %174 = vmatpush3.xpose.msk.msra.mxu0 %vm19_vm0, %v29_v0 }
   0x4   :  { %8 = vsyncpa [#allocation4], 0  ;;  %175 = vmatprep.subr.msk.mxu0 %vm19_vm0, %v28_v1  ;;  %v27_v4 = vld [vmem:[%s275_s1 + $0x8] sm:$0xff]  ;;  %v26_v5 = vld [vmem:[%s275_s1] sm:$0xff]  ;;  %s211_s25 = smov [#allocation3]  }
   0x5   :  { %v25_v6 = vld [vmem:[%s274_s0 + $0x8] sm:$0xff]  ;;  %v166_v13 = vld [vmem:[%s276_s2] ss:$0 sm:$0xff]  ;;  %s149_s26 = sshll.u32 %s211_s25, 4  ;;  %s150_s26 = int_to_ptr.vmem [resolvable:$true] %s149_s26 }
   0x6   :  { %s188_s0 = scalar_lea.vmem %s150_s26, 256  ;;  %p193_p1 = scmp.lt.s32.totalorder %s150_s26, %s150_s26 }
   0x7   :  { %176 = vmatpush3.xpose.msk.msra.mxu0 %vm19_vm0, %v28_v1  ;;  %p189_p0 = scmp.ne.s32.totalorder %s150_s26, %s188_s0  ;;  %p194_p2 = scmp.lt.s32.totalorder %s188_s0, %s188_s0 }
   0x8   :  { %177 = vmatprep.subr.msk.mxu0 %vm19_vm0, %v27_v4  ;;  %v23_v7 = vld [vmem:[#allocation2 + $0x8] sm:$0xff] }
   0x9   :  { %v22_v9 = vld [vmem:[#allocation2] sm:$0xff]  ;;  %p195_p3 = por %p194_p2, %p193_p1 }
   0xb   :  { %178 = vmatpush3.xpose.msk.msra.mxu0 %vm19_vm0, %v27_v4  ;;  %p196_p4 = pnand %p195_p3, %p189_p0 }
   0xc   :  { %179 = vmatprep.subr.msk.mxu0 %vm19_vm0, %v26_v5 }
   0xf   :  { %180 = vmatpush3.xpose.msk.msra.mxu0 %vm19_vm0, %v26_v5 }
  0x12   :  { %182 = vmatmul.mubr.msk.f32.vlgmr.msra.gmra.mxu0 %vm19_vm0, %v25_v6 }
  0xd2   :  { %v183_v8 = vpop.f32.mrf.mxu0 }
  0xd3   :  { %v125_v10 = vadd.f32 %v183_v8, %v23_v7 }
  0xd4   :  { %v115_v11 = vpop.f32.mrf.mxu0 }
  0xd5   :  { %127 = vst.msk [vmem:[#allocation2 + $0x8] sm:$0xff] %vm19_vm0, %v125_v10  ;;  %v124_v12 = vadd.f32 %v115_v11, %v22_v9 }
  0xd7   :  { %126 = vst.msk [vmem:[#allocation2] sm:$0xff] %vm19_vm0, %v124_v12 }
  0xdc   :  { %v132_v14 = vld [vmem:[#allocation2 + $0x8] sm:$0xff] }
  0xdd   :  { %v141_v15 = vadd.f32 %v166_v13, %v132_v14 }
  0xde   :  { %v131_v16 = vld [vmem:[#allocation2] sm:$0xff] }
  0xdf   :  { %v140_v17 = vadd.f32 %v166_v13, %v131_v16  ;;  %143 = vst.msk [vmem:[#allocation3 + $0x8] sm:$0xff] %vm19_vm0, %v141_v15 }
  0xe1   :  { %142 = vst.msk [vmem:[#allocation3] sm:$0xff] %vm19_vm0, %v140_v17 }
  0xe2   :  { %199 = shalt.err (!%p196_p4)
}
  0xe3   :  { %s212_s27 = smov 128   ;;  %s213_s2 = smov 8  }
  0xe4   :  { %155 = dma.vmem_to_hbm [thread:$0]  %s150_s26, 256, %s277_s3, [#allocation4], %s212_s27, %s212_s27, %s213_s2  }
  0xe5   :  { %208 = dma.done.wait [#allocation4], 256  }
  0xe6   :  { %209 = vsyncadd [#allocation4], 4294967040 }
  0xe7   :  { %159 = vsyncpa [#allocation4], 1 }

// kernel: multi_head_attention.4
= control target key start
LH: loop header
LB: loop body
LE: loop exit
PB: predicated region body
PF: predicated region fallthrough
CT: control target
= control target key end

     0   :  { %10 = vsyncpa [#allocation3], 0  ;;  %s1602_s0 = inlined_call_operand.vmem [shape: f32[2,8,32], index: 0, kind: input, shape index: {}]   ;;  %s1603_s1 = inlined_call_operand.vmem [shape: f32[2,8,32], index: 1, kind: input, shape index: {}]   ;;  %s1604_s2 = inlined_call_operand.vmem [shape: f32[2,8,32], index: 2, kind: input, shape index: {}]   ;;  %s1605_s3 = inlined_call_operand.vmem [shape: f32[2,8,32], index: 3, kind: output, shape index: {0}]   ;;  %s1606_s4 = inlined_call_operand.hbm [shape: f32[2,4,8,8], index: 4, kind: output, shape index: {1}]  }
   0x1   :  { %12 = vsyncpa [#allocation3 + $0x1], 0  ;;  %s1393_s15 = smov 0   ;;  %s1395_s16 = smov 0  }
   0x2   :  { %s1397_s17 = smov 0   ;;  %s1399_s18 = smov 0  }
   0x3   :  { %s1401_s19 = smov 0   ;;  %s1403_s20 = smov 0  }
   0x4 LB: > { %s1113_s21 = sadd.s32 4294967295, %s1356_s20   ;;  %s1114_s22 = sadd.s32 4294967294, %s1356_s20   ;;  %s1356_s20 = sphi %s1403_s20, %s18_s20   ;;  %s1352_s19 = sphi %s1401_s19, %s1613_s19   ;;  %s1348_s18 = sphi %s1399_s18, %s1612_s18   ;;  %s1344_s17 = sphi %s1397_s17, %s1611_s17   ;;  %s1340_s16 = sphi %s1395_s16, %s1610_s16   ;;  %s1336_s15 = sphi %s1393_s15, %s1609_s15  }
   0x5   : > { %s30_s23 = sadd.s32 1, %s1352_s19  ;;  %s147_s24 = sadd.s32 1, %s1344_s17 }
   0x6   : > { %p32_p0 = scmp.ge.s32.totalorder %s30_s23, 2  ;;  %p157_p1 = scmp.ne.s32.totalorder %s1344_s17, %s1340_s16 }
   0x7   : > { %p158_p2 = scmp.eq.s32.totalorder %s1113_s21, 1  ;;  %p163_p3 = scmp.ne.s32.totalorder %s1340_s16, %s1336_s15 }
   0x8   : > { %s1615_s23 = smov (%p32_p0, %s30_s23), 0  ;;  %p164_p5 = scmp.eq.s32.totalorder %s1114_s22, 1 }
   0x9   : > { %p1433_p4 = por %p158_p2, %p157_p1  ;;  %s142_s26 = ssub.s32 %s1352_s19, %s1615_s23 }
   0xa   : > { %p1117_p6 = scmp.ge.s32.totalorder %s1356_s20, 1  ;;  %p145_p7 = scmp.eq.s32.totalorder %s142_s26, 0 }
   0xb   : > { %p1440_p8 = por %p164_p5, %p163_p3  ;;  %p206_p9 = scmp.lt.s32.totalorder %s1356_s20, 3 }
   0xc   : > { %s1446_s28 = scalar_select %p145_p7, %s1344_s17, %s147_s24  }
   0xd   : > { %p207_p10 = pnand %p1117_p6, %p206_p9 }
   0xe   : > { %p249_p11 = scmp.lt.s32.totalorder (!%p207_p10), %s1348_s18, 1  ;;  %s1360_s11 = smov (!%p207_p10), 120  }
   0xf   : > { %210 = sbr.rel (%p207_p10) target bundleno = 1405 (0x57d), region = 32  ;;  %s1361_s12 = smov (!%p207_p10), 112  }
  0x10   : > { %s1362_s13 = smov (!%p207_p10), 104   ;;  %s246_s24 = sand.u32 (!%p207_p10), 1, %s1340_s16  }
  0x11   : > { %s1118_s26 = sshll.u32 (!%p207_p10), %s246_s24, 5  ;;  %s1363_s5 = smov (!%p207_p10), 8  }
  0x12   : > { %s1364_s6 = smov (!%p207_p10), 16  }
  0x14   : > { %v1358_v0 = vmov 0.0   ;;  %vm1359_vm0 = vmmov 0   ;;  %s250_s29 = scalar_select %p249_p11, %s1348_s18, 1  ;;  %vm275_vm1 = vcmask 64512  }
  0x15   : > { %1160 = vmatprep.subr.mxu0 %v1358_v0  ;;  %1162 = vmatprep.mubr.msk.f32.mxu0 %vm1359_vm0, %v1358_v0 }
  0x16   : > { %1165 = vmatprep.subr.mxu1 %v1358_v0  ;;  %1167 = vmatprep.mubr.msk.f32.mxu1 %vm1359_vm0, %v1358_v0  ;;  %s1456_s30 = sshll.u32 %s250_s29, 3  ;;  %s1490_s29 = scalar_lea.vmem [#allocation2], %s1118_s26 }
  0x17   : > { %s259_s7 = scalar_lea.vmem %s1603_s1, %s1456_s30  ;;  %s255_s10 = scalar_lea.vmem %s1602_s0, %s1456_s30 }
  0x18   : > { %v273_v1 = vld [vmem:[%s259_s7] sm:$0xff]  ;;  %s263_s22 = scalar_lea.vmem %s1604_s2, %s1456_s30  ;;  %s1143_s7 = sshll.u32 %s1348_s18, 9 }
  0x19   : > { %v271_v2 = vld [vmem:[%s255_s10] sm:$0xff]  ;;  %1161 = vmatpush3.xpose.msk.msra.mxu0 %vm275_vm1, %v273_v1  ;;  %439 = vrot.lane.b32.xlu1 %v273_v1, %s1360_s11  ;;  %s983_s8 = sshll.u32 %s1490_s29, 4  ;;  %s1365_s18 = smov [#allocation2]   ;;  %s1546_s8 = int_to_ptr.vmem [resolvable:$true] %s983_s8 }
  0x1a   : > { %v272_v3 = vmul.f32 0.35355338, %v271_v2  ;;  %1175 = vmatprep.subr.mxu0 %v1358_v0  ;;  %v1482_v12 = vld [vmem:[%s263_s22] sm:$0xff]  ;;  %s1284_s14 = sshll.u32 %s1365_s18, 4  ;;  %s1285_s14 = int_to_ptr.vmem [resolvable:$false] %s1284_s14 }
  0x1b   : > { %1166 = vmatpush3.msra.mxu1 %v1482_v12  ;;  %s1286_s21 = scalar_lea.vmem %s1285_s14, 1024  ;;  %p1287_p1 = scmp.lt.s32.totalorder %s1546_s8, %s1285_s14 }
  0x1c   : > { %1163 = vmatmul.mubr.msk.f32.vlgmr.msra.gmra.mxu0 %vm275_vm1, %v272_v3  ;;  %1170 = vmatprep.subr.mxu1 %v1358_v0 }
  0x1d   : > { %1177 = vmatprep.mubr.msk.f32.mxu0 %vm1359_vm0, %v1358_v0  ;;  %437 = vrot.lane.b32.xlu1 %v272_v3, %s1360_s11 }
  0x21   : > { %605 = vrot.lane.b32.xlu1 %v272_v3, %s1361_s12 }
  0x25   : > { %774 = vrot.lane.b32.xlu1 %v273_v1, %s1362_s13 }
  0x29   : > { %772 = vrot.lane.b32.xlu1 %v272_v3, %s1362_s13 }
  0x8b   : > { %v440_v14 = vpop.permute.xlu1 %439 }
  0x8f   : > { %v438_v15 = vpop.permute.xlu1 %437 }
  0x93   : > { %v606_v17 = vpop.permute.xlu1 %605 }
  0x97   : > { %v775_v20 = vpop.permute.xlu1 %774 }
  0x9b   : > { %v773_v21 = vpop.permute.xlu1 %772 }
  0xdc   : > { %v348_v4 = vpop.f32.mrf.mxu0 }
  0xdd   : > { %v352_v5 = vsel %vm275_vm1, %v348_v4, -inf }
  0xde   : > { %353 = vmax.xlane.f32.xlu0 %v352_v5  ;;  %v1164_v6 = vpop.f32.mrf.mxu0 }
 0x167   : > { %v354_v7 = vpop.xlane.xlu0 %353 }
 0x168   : > { %v355_v8 = vsub.f32 %v348_v4, %v354_v7 }
 0x16a   : > { %v356_v9 = vmul.f32 1.442695, %v355_v8 }
 0x16c   : > { %1264 = vpow2.f32 %v356_v9 }
 0x179   : > { %v1265_v10 = vpop.eup %1264 }
 0x17a   : > { %v358_v11 = vsel %vm275_vm1, %v1265_v10, 0.0 }
 0x17b   : > { %359 = vadd.xlane.f32.xlu0 %v358_v11 }
 0x191   : > { %607 = vrot.lane.b32.xlu0 %v273_v1, %s1361_s12 }
 0x204   : > { %v360_v13 = vpop.xlane.xlu0 %359 }
 0x205   : > { %1266 = vrcp.f32 %v360_v13 }
 0x208   : > { %v608_v19 = vpop.permute.xlu0 %607 }
 0x212   : > { %v1267_v16 = vpop.eup %1266 }
 0x213   : > { %v362_v18 = vmul.f32 %v1267_v16, %v1265_v10 }
 0x215   : > { %363 = vst.msk [vmem:[%s1490_s29] sm:$0xff] %vm275_vm1, %v362_v18  ;;  %1168 = vmatmul.mubr.msk.f32.vlgmr.msra.gmra.mxu1 %vm275_vm1, %v362_v18 }
 0x216   : > { %1171 = vmatpush3.xpose.msk.msra.mxu1 %vm275_vm1, %v440_v14  ;;  %1172 = vmatprep.mubr.msk.f32.mxu1 %vm1359_vm0, %v1358_v0 }
 0x217   : > { %1180 = vmatprep.subr.mxu1 %v1358_v0 }
 0x219   : > { %1173 = vmatmul.mubr.msk.f32.vlgmr.msra.gmra.mxu1 %vm275_vm1, %v438_v15 }
 0x21a   : > { %1181 = vmatpush3.xpose.msk.msra.mxu1 %vm275_vm1, %v608_v19  ;;  %1182 = vmatprep.mubr.msk.f32.mxu1 %vm1359_vm0, %v1358_v0 }
 0x21b   : > { %1190 = vmatprep.subr.mxu1 %v1358_v0 }
 0x21d   : > { %1183 = vmatmul.mubr.msk.f32.vlgmr.msra.gmra.mxu1 %vm275_vm1, %v606_v17 }
 0x21e   : > { %1191 = vmatpush3.xpose.msk.msra.mxu1 %vm275_vm1, %v775_v20  ;;  %1192 = vmatprep.mubr.msk.f32.mxu1 %vm1359_vm0, %v1358_v0 }
 0x221   : > { %1193 = vmatmul.mubr.msk.f32.vlgmr.msra.gmra.mxu1 %vm275_vm1, %v773_v21 }
 0x2d5   : > { %v1509_v22 = vpop.f32.mrf.mxu1 }
 0x2d7   : > { %v1169_v23 = vpop.f32.mrf.mxu1 }
 0x2d9   : > { %v511_v24 = vpop.f32.mrf.mxu1 }
 0x2da   : > { %v515_v25 = vsel %vm275_vm1, %v511_v24, -inf }
 0x2db   : > { %516 = vmax.xlane.f32.xlu1 %v515_v25  ;;  %v1174_v26 = vpop.f32.mrf.mxu1 }
 0x2dd   : > { %v679_v27 = vpop.f32.mrf.mxu1 }
 0x2de   : > { %v683_v28 = vsel %vm275_vm1, %v679_v27, -inf }
 0x2df   : > { %684 = vmax.xlane.f32.xlu0 %v683_v28  ;;  %v1184_v29 = vpop.f32.mrf.mxu1 }
 0x2e1   : > { %v846_v30 = vpop.f32.mrf.mxu1 }
 0x2e2   : > { %v850_v31 = vsel %vm275_vm1, %v846_v30, -inf }
 0x2e3   : > { %851 = vmax.xlane.f32.xlu1 %v850_v31  ;;  %v1194_v32 = vpop.f32.mrf.mxu1 }
 0x364   : > { %v517_v33 = vpop.xlane.xlu1 %516 }
 0x365   : > { %v518_v34 = vsub.f32 %v511_v24, %v517_v33 }
 0x367   : > { %v519_v35 = vmul.f32 1.442695, %v518_v34 }
 0x368   : > { %v685_v36 = vpop.xlane.xlu0 %684 }
 0x369   : > { %1268 = vpow2.f32 %v519_v35  ;;  %v686_v37 = vsub.f32 %v679_v27, %v685_v36 }
 0x36b   : > { %v687_v38 = vmul.f32 1.442695, %v686_v37 }
 0x36c   : > { %v852_v43 = vpop.xlane.xlu1 %851 }
 0x36d   : > { %1270 = vpow2.f32 %v687_v38  ;;  %v853_v44 = vsub.f32 %v846_v30, %v852_v43 }
 0x36f   : > { %v854_v45 = vmul.f32 1.442695, %v853_v44 }
 0x371   : > { %1272 = vpow2.f32 %v854_v45 }
 0x376   : > { %v1269_v39 = vpop.eup %1268 }
 0x377   : > { %v521_v40 = vsel %vm275_vm1, %v1269_v39, 0.0 }
 0x378   : > { %522 = vadd.xlane.f32.xlu1 %v521_v40 }
 0x37a   : > { %v1271_v41 = vpop.eup %1270 }
 0x37b   : > { %v689_v42 = vsel %vm275_vm1, %v1271_v41, 0.0 }
 0x37c   : > { %690 = vadd.xlane.f32.xlu0 %v689_v42 }
 0x37e   : > { %v1273_v46 = vpop.eup %1272 }
 0x37f   : > { %v856_v47 = vsel %vm275_vm1, %v1273_v46, 0.0 }
 0x389   : > { %696 = vrot.lane.b32.xlu1 %v1482_v12, %s1361_s12  ;;  %s1550_s12 = scalar_lea.sflag [#allocation3], %s246_s24 }
 0x392   : > { %529 = vrot.lane.b32.xlu0 %v1482_v12, %s1360_s11  ;;  %s1544_s11 = scalar_lea.hbm %s1606_s4, %s1143_s7 }
 0x3ad   : > { %857 = vadd.xlane.f32.xlu1 %v856_v47 }
 0x3be   : > { %863 = vrot.lane.b32.xlu1 %v1482_v12, %s1362_s13  ;;  %s1280_s13 = scalar_lea.vmem %s1546_s8, 512 }
 0x3bf   : > { %p1281_p12 = scmp.ne.s32.totalorder %s1546_s8, %s1280_s13  ;;  %p1288_p2 = scmp.lt.s32.totalorder %s1286_s21, %s1280_s13 }
 0x3c1   : > { %p1282_p13 = pnand %p1281_p12, %p1433_p4  ;;  %p1289_p3 = por %p1288_p2, %p1287_p1 }
 0x3c3   : > { %p1283_p0 = pneg %p1282_p13 }
 0x3c5   : > { %p1290_p5 = pnand %p1289_p3, %p1283_p0 }
 0x401   : > { %v523_v48 = vpop.xlane.xlu1 %522 }
 0x402   : > { %1274 = vrcp.f32 %v523_v48 }
 0x405   : > { %v691_v49 = vpop.xlane.xlu0 %690  ;;  %v697_v53 = vpop.permute.xlu1 %696 }
 0x406   : > { %1276 = vrcp.f32 %v691_v49 }
 0x409   : > { %v530_v50 = vpop.permute.xlu0 %529 }
 0x40a   : > { %1176 = vmatpush3.msra.mxu0 %v530_v50 }
 0x40b   : > { %1185 = vmatprep.subr.mxu0 %v1358_v0 }
 0x40f   : > { %v1275_v51 = vpop.eup %1274 }
 0x410   : > { %v525_v52 = vmul.f32 %v1275_v51, %v1269_v39 }
 0x412   : > { %1128 = vst.msk [vmem:[%s1490_s29 + $0x8] sm:$0xff] %vm275_vm1, %v525_v52  ;;  %1178 = vmatmul.mubr.msk.f32.vlgmr.msra.gmra.mxu0 %vm275_vm1, %v525_v52 }
 0x413   : > { %v1277_v54 = vpop.eup %1276  ;;  %1186 = vmatpush3.msra.mxu0 %v697_v53  ;;  %1187 = vmatprep.mubr.msk.f32.mxu0 %vm1359_vm0, %v1358_v0 }
 0x414   : > { %v693_v55 = vmul.f32 %v1277_v54, %v1271_v41  ;;  %1195 = vmatprep.subr.mxu0 %v1358_v0 }
 0x416   : > { %1132 = vst.msk [vmem:[%s1490_s29 + $0x10] sm:$0xff] %vm275_vm1, %v693_v55  ;;  %1188 = vmatmul.mubr.msk.f32.vlgmr.msra.gmra.mxu0 %vm275_vm1, %v693_v55 }
 0x417   : > { %1197 = vmatprep.mubr.msk.f32.mxu0 %vm1359_vm0, %v1358_v0 }
 0x436   : > { %v858_v56 = vpop.xlane.xlu1 %857 }
 0x437   : > { %1278 = vrcp.f32 %v858_v56 }
 0x43a   : > { %v864_v57 = vpop.permute.xlu1 %863 }
 0x43b   : > { %1196 = vmatpush3.msra.mxu0 %v864_v57 }
 0x444   : > { %v1279_v58 = vpop.eup %1278 }
 0x445   : > { %v860_v59 = vmul.f32 %v1279_v58, %v1273_v46 }
 0x447   : > { %1136 = vst.msk [vmem:[%s1490_s29 + $0x18] sm:$0xff] %vm275_vm1, %v860_v59  ;;  %1198 = vmatmul.mubr.msk.f32.vlgmr.msra.gmra.mxu0 %vm275_vm1, %v860_v59 }
 0x4d2   : > { %v601_v60 = vpop.f32.mrf.mxu0 }
 0x4d3   : > { %940 = vrot.lane.b32.xlu0 %v601_v60, %s1363_s5 }
 0x4d4   : > { %v1179_v61 = vpop.f32.mrf.mxu0 }
 0x4d6   : > { %v768_v62 = vpop.f32.mrf.mxu0 }
 0x4d7   : > { %944 = vrot.lane.b32.xlu1 %v768_v62, %s1364_s6 }
 0x4d8   : > { %v1189_v63 = vpop.f32.mrf.mxu0 }
 0x4d9   : > { %1293 = shalt.err (!%p1290_p5)
}
 0x4da   : > { %s1294_s22 = scalar_lea.hbm %s1544_s11, 512  ;;  %s1298_s29 = scalar_lea.hbm %s1606_s4, 1024 }
 0x4db   : > { %p1295_p6 = scmp.ne.s32.totalorder %s1544_s11, %s1294_s22  ;;  %p1299_p10 = scmp.lt.s32.totalorder %s1544_s11, %s1606_s4 }
 0x4dc   : > { %p1300_p11 = scmp.lt.s32.totalorder %s1298_s29, %s1294_s22 }
 0x4dd   : > { %p1296_p7 = pnand %p1295_p6, %p1433_p4 }
 0x4de   : > { %p1301_p12 = por %p1300_p11, %p1299_p10 }
 0x4df   : > { %p1297_p9 = pneg %p1296_p7 }
 0x4e1   : > { %p1302_p13 = pnand %p1301_p12, %p1297_p9 }
 0x4e3   : > { %1305 = shalt.err (!%p1302_p13)
}
 0x4e4   : > { %s1366_s9 = smov 128   ;;  %s1367_s10 = smov 24   ;;  %vm952_vm2 = vcmask 130048   ;;  %vm954_vm3 = vcmask 195584   ;;  %vm956_vm4 = vcmask 261120  }
 0x4e5   : > { %1200 = dma.vmem_to_hbm [thread:$0]  (%p1433_p4), %s1546_s8, 512, %s1544_s11, %s1550_s12, %s1366_s9, %s1366_s9, %s1363_s5  }
 0x4e6   : > { %s270_s25 = scalar_lea.vmem %s1605_s3, %s1456_s30 }
 0x507   : > { %v935_v0 = vpop.f32.mrf.mxu0 }
 0x508   : > { %948 = vrot.lane.b32.xlu0 %v935_v0, %s1367_s10 }
 0x509   : > { %v1199_v1 = vpop.f32.mrf.mxu0 }
 0x545   : > { %v941_v2 = vpop.permute.xlu0 %940 }
 0x546   : > { %v951_v4 = vsel %vm275_vm1, %v1509_v22, %v941_v2 }
 0x549   : > { %v945_v3 = vpop.permute.xlu1 %944 }
 0x54a   : > { %v953_v5 = vsel %vm952_vm2, %v951_v4, %v945_v3 }
 0x57a   : > { %v949_v6 = vpop.permute.xlu0 %948 }
 0x57b   : > { %v955_v7 = vsel %vm954_vm3, %v953_v5, %v949_v6 }
 0x57c   : > { %957 = vst.msk [vmem:[%s270_s25] sm:$0xff] %vm956_vm4, %v955_v7 }
 0x57d PF: > { %p1206_p4 = scmp.ge.s32.totalorder %s1356_s20, 2  ;;  %s1008_s5 = sand.u32 1, %s1336_s15  }
 0x57e   : > { %s1009_s8 = scalar_lea.sflag [#allocation3], %s1008_s5 }
 0x57f   : > { %p1203_p0 = pnand %p1206_p4, %p1440_p8 }
 0x581   : > { %p1204_p1 = pneg %p1203_p0 }
 0x583   : > { %1331 = dma.done.wait (%p1204_p1), %s1009_s8, 512  }
 0x584   : > { %1333 = vsyncadd (%p1204_p1), %s1009_s8, 4294966784  ;;  %s18_s20 = sadd.s32 1, %s1356_s20   ;;  %s1609_s15 = smov %s1340_s16 }
 0x585   : > { %p15_p2 = scmp.ge.s32.totalorder %s18_s20, 4   ;;  %s1610_s16 = smov %s1344_s17 }
 0x586   : > { %s1611_s17 = smov %s1446_s28  ;;  %s1612_s18 = smov %s1352_s19 }
 0x587   : > { %s1613_s19 = smov %s1615_s23  ;;  %17 = sbr.rel (!%p15_p2) target bundleno = 4 (0x4), region = 88 }
 0x58c   :  { %1014 = vsyncpa [#allocation3], 1 }
 0x58d   :  { %1016 = vsyncpa [#allocation3 + $0x1], 1 }

</bundles_post_ra>
